<compile_context>
chip_gen: v5e
topology: v5e:2x2
jax: 0.10.0
libtpu: 0.0.40
codegen_flags: <defaults>
</compile_context>

<pallas_src>
import math

import jax
import jax.numpy as jnp
from jax.experimental import pallas as pl
from jax.experimental.pallas import tpu as pltpu


def _round_up(x, m):
    return ((x + m - 1) // m) * m


def lora_kernel(x_ref, a_ref, b_ref, o_ref, xa_ref):
    # x_ref : (tile_m, in_features)   VMEM  activation tile
    # a_ref : (in_features, rank)     VMEM  lora_A^T (full, lane-dense)
    # b_ref : (rank, tile_n)          VMEM  (lora_B * scaling)^T tile (lane-dense)
    # o_ref : (tile_m, tile_n)        VMEM  output tile
    # xa_ref: (tile_m, rank) f32 scratch, computed once per M tile (j == 0)
    #         and reused across all N tiles of that M tile.
    @pl.when(pl.program_id(1) == 0)
    def _():
        xa_ref[...] = jnp.dot(
            x_ref[...], a_ref[...], preferred_element_type=jnp.float32)

    xa = xa_ref[...].astype(b_ref.dtype)
    o_ref[...] = jnp.dot(
        xa, b_ref[...], preferred_element_type=jnp.float32).astype(o_ref.dtype)


def lora_forward(x, lora_A, lora_B, scaling, *, tile_m=256, tile_n=512,
                 compute_dtype=None):
    """Pallas LoRA forward.  x: (..., in_features) -> (..., out_features).

    compute_dtype: dtype used for the MXU inputs (e.g. jnp.bfloat16 to halve
    HBM traffic on v6e/v7x).  Accumulation is always f32.
    """
    orig_lead = x.shape[:-1]
    in_features = x.shape[-1]
    rank, in_a = lora_A.shape
    out_features, rank_b = lora_B.shape
    assert in_a == in_features and rank_b == rank

    out_dtype = x.dtype
    cdt = compute_dtype if compute_dtype is not None else x.dtype

    # Lane-dense weight layouts; fold the alpha/rank scaling into B so the
    # kernel has no epilogue multiply.
    a_t = lora_A.T.astype(cdt)                                   # (in, rank)
    b_t = (lora_B.astype(jnp.float32) * scaling).T.astype(cdt)   # (rank, out)

    x2 = x.reshape(-1, in_features).astype(cdt)
    M = x2.shape[0]

    # Clamp tiles to the (padded) problem size; keep (8, 128) alignment.
    tile_m = min(tile_m, _round_up(M, 8))
    tile_n = min(tile_n, _round_up(out_features, 128))

    # Pad M and N so the grid divides evenly (padded rows/cols are zeros and
    # are sliced away afterwards) -- avoids falling back to tiny tiles.
    Mp = _round_up(M, tile_m)
    Np = _round_up(out_features, tile_n)
    if Mp != M:
        x2 = jnp.pad(x2, ((0, Mp - M), (0, 0)))
    if Np != out_features:
        b_t = jnp.pad(b_t, ((0, 0), (0, Np - out_features)))

    grid = (Mp // tile_m, Np // tile_n)

    isz = jnp.dtype(cdt).itemsize
    osz = jnp.dtype(out_dtype).itemsize

    # Rough VMEM need (double-buffered tiles + weights + scratch), with 2x
    # headroom, floored at 32 MiB and capped at 64 MiB (safe on v7x).
    vmem_needed = (2 * tile_m * max(in_features, 128) * isz        # x tiles
                   + 2 * max(rank, 8) * tile_n * isz               # B tiles
                   + 2 * max(in_features, 8) * 128 * isz           # A (padded)
                   + 2 * tile_m * tile_n * osz                     # out tiles
                   + tile_m * 128 * 4)                             # xa scratch
    vmem_limit = int(min(64 * 1024 * 1024,
                         max(32 * 1024 * 1024, 2 * vmem_needed)))

    cost = pl.CostEstimate(
        flops=2 * M * rank * (in_features + out_features),
        transcendentals=0,
        bytes_accessed=(M * in_features * isz + M * out_features * osz
                        + in_features * rank * isz
                        + rank * out_features * isz),
    )

    out = pl.pallas_call(
        lora_kernel,
        out_shape=jax.ShapeDtypeStruct((Mp, Np), out_dtype),
        grid=grid,
        in_specs=[
            pl.BlockSpec((tile_m, in_features), lambda i, j: (i, 0)),
            pl.BlockSpec((in_features, rank), lambda i, j: (0, 0)),
            pl.BlockSpec((rank, tile_n), lambda i, j: (0, j)),
        ],
        out_specs=pl.BlockSpec((tile_m, tile_n), lambda i, j: (i, j)),
        scratch_shapes=[pltpu.VMEM((tile_m, rank), jnp.float32)],
        compiler_params=pltpu.CompilerParams(
            dimension_semantics=("parallel", "arbitrary"),
            vmem_limit_bytes=vmem_limit,
        ),
        cost_estimate=cost,
    )(x2, a_t, b_t)

    out = out[:M, :out_features]
    return out.reshape(*orig_lead, out_features)


if __name__ == "__main__":
    # Small shapes consistent with the module: a batch of sequences of hidden
    # vectors going through a LoRA adapter.
    batch, seq = 2, 8
    in_features, out_features = 32, 32
    rank, alpha = 4, 32
    scaling = alpha / rank

    key = jax.random.PRNGKey(0)
    kx, ka, kb = jax.random.split(key, 3)

    x = jax.random.normal(kx, (batch, seq, in_features), dtype=jnp.float32)

    # lora_A: kaiming_uniform_(a=sqrt(5)) => U(-1/sqrt(in), 1/sqrt(in))
    bound_a = 1.0 / math.sqrt(in_features)
    lora_A = jax.random.uniform(
        ka, (rank, in_features), minval=-bound_a, maxval=bound_a,
        dtype=jnp.float32)
    # The module inits lora_B to zeros; use small deterministic random values
    # instead so the numerical check is non-trivial.
    lora_B = 0.01 * jax.random.normal(
        kb, (out_features, rank), dtype=jnp.float32)

    y = lora_forward(x, lora_A, lora_B, scaling)
    y = jax.block_until_ready(y)

    # Pure-JAX reference (dropout in eval mode == identity).
    y_ref = (x @ lora_A.T) @ lora_B.T * scaling

    assert y.shape == (batch, seq, out_features), y.shape
    assert jnp.allclose(y, y_ref, atol=1e-5, rtol=1e-5), "mismatch vs reference"

    print("KERNEL_OK")
</pallas_src>

<mosaic_0001>
module attributes {stable_mosaic.version = 11 : i64} {
  func.func @lora_kernel(%arg0: i32, %arg1: i32, %arg2: memref<16x32xf32, #tpu.memory_space<vmem>>, %arg3: memref<32x4xf32, #tpu.memory_space<vmem>>, %arg4: memref<4x128xf32, #tpu.memory_space<vmem>>, %arg5: memref<16x128xf32, #tpu.memory_space<vmem>>, %arg6: memref<16x4xf32, #tpu.memory_space<vmem>>) attributes {dimension_semantics = [#tpu.dimension_semantics<parallel>, #tpu.dimension_semantics<arbitrary>], iteration_bounds = array<i64: 1, 1>, scalar_prefetch = 0 : i64, scratch_operands = 1 : i64, tpu.core_type = #tpu.core_type<tc>, window_params = [{transform_indices = @transform_0, window_bounds = array<i64: 16, 32>}, {pipeline_mode = #tpu.pipeline_mode<synchronous>, transform_indices = @transform_1, window_bounds = array<i64: 32, 4>}, {transform_indices = @transform_2, window_bounds = array<i64: 4, 128>}, {transform_indices = @transform_3, window_bounds = array<i64: 16, 128>}]} {
    %c0_i32 = arith.constant 0 : i32
    %0 = arith.cmpi eq, %arg1, %c0_i32 : i32
    %1 = arith.extui %0 : i1 to i32
    %c0_i32_0 = arith.constant 0 : i32
    %2 = arith.cmpi ne, %1, %c0_i32_0 : i32
    scf.if %2 {
      %c0_6 = arith.constant 0 : index
      %c0_7 = arith.constant 0 : index
      %7 = vector.load %arg2[%c0_6, %c0_7] : memref<16x32xf32, #tpu.memory_space<vmem>>, vector<16x32xf32>
      %c0_8 = arith.constant 0 : index
      %c0_9 = arith.constant 0 : index
      %8 = vector.load %arg3[%c0_8, %c0_9] : memref<32x4xf32, #tpu.memory_space<vmem>>, vector<32x4xf32>
      %cst_10 = arith.constant dense<0.000000e+00> : vector<16x4xf32>
      %9 = tpu.matmul %7, %8, %cst_10 {dimension_numbers = #tpu.dot_dimension_numbers<[1], [0], [0], [1], [0, 0, 1, 1], [], []>} : vector<16x32xf32>, vector<32x4xf32>, vector<16x4xf32> -> vector<16x4xf32>
      %c0_11 = arith.constant 0 : index
      %c0_12 = arith.constant 0 : index
      %10 = vector.load %arg6[%c0_11, %c0_12] : memref<16x4xf32, #tpu.memory_space<vmem>>, vector<16x4xf32>
      tpu.vector_store %arg6[%c0_11, %c0_12], %9 {strides = array<i32>} : memref<16x4xf32, #tpu.memory_space<vmem>>, vector<16x4xf32>,
    } else {
    }
    %c0 = arith.constant 0 : index
    %c0_1 = arith.constant 0 : index
    %3 = vector.load %arg6[%c0, %c0_1] : memref<16x4xf32, #tpu.memory_space<vmem>>, vector<16x4xf32>
    %c0_2 = arith.constant 0 : index
    %c0_3 = arith.constant 0 : index
    %4 = vector.load %arg4[%c0_2, %c0_3] : memref<4x128xf32, #tpu.memory_space<vmem>>, vector<4x128xf32>
    %cst = arith.constant dense<0.000000e+00> : vector<16x128xf32>
    %5 = tpu.matmul %3, %4, %cst {dimension_numbers = #tpu.dot_dimension_numbers<[1], [0], [0], [1], [0, 0, 1, 1], [], []>} : vector<16x4xf32>, vector<4x128xf32>, vector<16x128xf32> -> vector<16x128xf32>
    %c0_4 = arith.constant 0 : index
    %c0_5 = arith.constant 0 : index
    %6 = vector.load %arg5[%c0_4, %c0_5] : memref<16x128xf32, #tpu.memory_space<vmem>>, vector<16x128xf32>
    tpu.vector_store %arg5[%c0_4, %c0_5], %5 {strides = array<i32>} : memref<16x128xf32, #tpu.memory_space<vmem>>, vector<16x128xf32>,
    return
  }
  func.func @transform_0(%arg0: i32, %arg1: i32) -> (i32, i32) {
    %c0_i32 = arith.constant 0 : i32
    %c0_i32_0 = arith.constant 0 : i32
    return %arg0, %c0_i32 : i32, i32
  }
  func.func @transform_1(%arg0: i32, %arg1: i32) -> (i32, i32) {
    %c0_i32 = arith.constant 0 : i32
    %c0_i32_0 = arith.constant 0 : i32
    %c0_i32_1 = arith.constant 0 : i32
    return %c0_i32, %c0_i32_0 : i32, i32
  }
  func.func @transform_2(%arg0: i32, %arg1: i32) -> (i32, i32) {
    %c0_i32 = arith.constant 0 : i32
    %c0_i32_0 = arith.constant 0 : i32
    return %c0_i32, %arg1 : i32, i32
  }
  func.func @transform_3(%arg0: i32, %arg1: i32) -> (i32, i32) {
    %c0_i32 = arith.constant 0 : i32
    return %arg0, %arg1 : i32, i32
  }
}

</mosaic_0001>

<bundles_post_ra>
// kernel: tpu_custom_call.1
= control target key start
LH: loop header
LB: loop body
LE: loop exit
PB: predicated region body
PF: predicated region fallthrough
CT: control target
= control target key end

     0   :  { %s201_s0 = inlined_call_operand.vmem [shape: f32[16,32], index: 0, kind: input, shape index: {}]   ;;  %s202_s1 = inlined_call_operand.vmem [shape: f32[32,4], index: 1, kind: input, shape index: {}]   ;;  %s203_s2 = inlined_call_operand.vmem [shape: f32[4,128], index: 2, kind: input, shape index: {}]   ;;  %s204_s3 = inlined_call_operand.hbm [shape: f32[16,128], index: 3, kind: output, shape index: {}]  }
   0x1   :  { %v24_v0 = vld [vmem:[%s202_s1 + $0x18] sm:$0xff]  ;;  %v23_v1 = vld [vmem:[%s202_s1 + $0x10] sm:$0xff]  ;;  %v22_v2 = vld [vmem:[%s202_s1 + $0x8] sm:$0xff] }
   0x2   :  { %120 = vmatpush.msra.mxu2 %v24_v0  ;;  %44 = vmatpush.msra.mxu0 %v24_v0 }
   0x3   :  { %8 = vsyncpa [#allocation4], 0  ;;  %v21_v3 = vld [vmem:[%s202_s1] sm:$0xff]  ;;  %v20_v4 = vld [vmem:[%s201_s0 + $0x8] sm:$0xff]  ;;  %vm25_vm0 = vcmask 261120   ;;  %vm68_vm1 = vcmask 1043456  }
   0x4   :  { %121 = vmatpush.msra.mxu2 %v23_v1  ;;  %45 = vmatpush.msra.mxu0 %v23_v1  ;;  %v19_v5 = vld [vmem:[%s201_s0] sm:$0xff]  ;;  %vm55_vm2 = vcmask 31744   ;;  %s154_s0 = smov [#allocation3]   ;;  %s155_s28 = smov 128  }
   0x5   :  { %v60_v6 = vld [vmem:[%s203_s2] sm:$0xf]  ;;  %s101_s1 = sshll.u32 %s154_s0, 4  ;;  %s103_s2 = sshll.u32 %s204_s3, 4  ;;  %s102_s1 = int_to_ptr.vmem [resolvable:$true] %s101_s1  ;;  %s104_s2 = int_to_ptr.hbm [resolvable:$true] %s103_s2 }
   0x6   :  { %122 = vmatpush.msra.mxu2 %v22_v2  ;;  %46 = vmatpush.msra.mxu0 %v22_v2  ;;  %s156_s29 = smov 8  }
   0x7   :  { %124 = vmatpush.msk.msra.mxu3 %vm68_vm1, %v60_v6  ;;  %117 = vmatpush.msk.msra.mxu1 %vm68_vm1, %v60_v6 }
   0x8   :  { %123 = vmatpush.msra.mxu2 %v21_v3  ;;  %47 = vmatpush.msra.mxu0 %v21_v3 }
   0x9   :  { %116 = vmatmul.msk.f32.vlgmr.msra.gmra.mxu2 %vm25_vm0, %v20_v4  ;;  %115 = vmatmul.msk.f32.vlgmr.msra.gmra.mxu0 %vm25_vm0, %v19_v5 }
  0x86   :  { %v49_v7 = vpop.f32.mrf.mxu0 }
  0x87   :  { %56 = vst.msk [vmem:[#allocation2] sm:$0xff] %vm55_vm2, %v49_v7 }
  0x8c   :  { %v52_v8 = vpop.f32.mrf.mxu2 }
  0x8d   :  { %57 = vst.msk [vmem:[#allocation2 + $0x8] sm:$0xff] %vm55_vm2, %v52_v8 }
  0x8e   :  { %v58_v9 = vld [vmem:[#allocation2] sm:$0xff] }
  0x8f   :  { %118 = vmatmul.msk.f32.vlgmr.msra.gmra.mxu1 %vm55_vm2, %v58_v9 }
  0x94   :  { %v59_v10 = vld [vmem:[#allocation2 + $0x8] sm:$0xff] }
  0x95   :  { %119 = vmatmul.msk.f32.vlgmr.msra.gmra.mxu3 %vm55_vm2, %v59_v10 }
 0x10c   :  { %v89_v11 = vpop.f32.mrf.mxu1 }
 0x10d   :  { %95 = vst [vmem:[#allocation3] sm:$0xff] %v89_v11 }
 0x118   :  { %v92_v12 = vpop.f32.mrf.mxu3 }
 0x119   :  { %96 = vst [vmem:[#allocation3 + $0x8] sm:$0xff] %v92_v12 }
 0x11a   :  { %109 = dma.vmem_to_hbm [thread:$0]  %s102_s1, 256, %s104_s2, [#allocation4], %s155_s28, %s155_s28, %s156_s29  }
 0x11b   :  { %152 = dma.done.wait [#allocation4], 256  }
 0x11c   :  { %153 = vsyncadd [#allocation4], 4294967040 }
 0x11d   :  { %114 = vsyncpa [#allocation4], 1 }

</bundles_post_ra>
